<compile_context>
chip_gen: v7x
topology: tpu7x:2x2x1
jax: 0.10.0
libtpu: 0.0.40
codegen_flags: <defaults>
</compile_context>

<pallas_src>
import jax
import jax.numpy as jnp
from jax.experimental import pallas as pl
from jax.experimental.pallas import tpu as pltpu


def _gcn_pe_mean_kernel(xs_ref, adj_ref, w1_ref, b1_ref, w2_ref, b2_ref, out_ref):
    """Single invocation, whole arrays resident in VMEM.

    xs_ref : (N, 3F)   concat of the 3 node-feature matrices along lanes
    adj_ref: (N, N)    row-normalized dense adjacency
    w1_ref : (3F, 3H)  block-diagonal W1
    b1_ref : (1, 3H)   tiled bias 1 (f32)
    w2_ref : (3H, 3C)  block-diagonal W2
    b2_ref : (1, 3C)   tiled bias 2 (f32)
    out_ref: (4, N, C) slots 0..2 = per-graph log-softmax, slot 3 = mean
    """
    adj = adj_ref[...]
    cdt = adj.dtype                      # matmul input dtype (f32, or bf16 fast path)
    nclass = w2_ref.shape[1] // 3

    # ---- layer 1: relu(adj @ (x @ W1) + b1), all 3 graphs in one pass ----------
    # sup1 produced directly in cdt (bf16 path: MXU f32-accumulate then pop as bf16).
    sup1 = jnp.dot(xs_ref[...], w1_ref[...], preferred_element_type=cdt)   # (N, 3H)
    h = jnp.dot(adj, sup1, preferred_element_type=jnp.float32)             # (N, 3H) f32
    h = jnp.maximum(h + b1_ref[...], 0.0)

    # dropout(p, training=self.training): identity at inference.

    # ---- layer 2: adj @ (h @ W2) + b2 -------------------------------------------
    sup2 = jnp.dot(h.astype(cdt), w2_ref[...], preferred_element_type=cdt)  # (N, 3C)
    logits = jnp.dot(adj, sup2, preferred_element_type=jnp.float32) + b2_ref[...]

    # ---- per-graph log_softmax (axis=1) + direct mean ----------------------------
    acc = None
    for i in range(3):
        lg = logits[:, i * nclass:(i + 1) * nclass]          # (N, C)
        m = jnp.max(lg, axis=-1, keepdims=True)
        sh = lg - m
        lse = jnp.log(jnp.sum(jnp.exp(sh), axis=-1, keepdims=True))
        logp = sh - lse
        out_ref[i] = logp
        acc = logp if acc is None else acc + logp
    out_ref[3] = acc * (1.0 / 3.0)


def _compiler_params():
    # Raise the scoped-VMEM limit (defaults: 16 MiB v5e / 32 MiB v6e,v7x) so the
    # whole-adj-in-VMEM design scales further before tiling is needed; capped by the
    # queried physical capacity (v7x has only 64 MiB per TC).
    try:
        cap = pltpu.get_tpu_info().vmem_capacity_bytes
        limit = min(int(cap * 3 // 4), 100 << 20)
        return pltpu.CompilerParams(vmem_limit_bytes=limit)
    except Exception:
        return pltpu.CompilerParams()


def gcn_pe_mean_forward(x, datareal1, datareal2, adj, w1, b1, w2, b2,
                        use_bf16=False, bf16_min_n=256):
    """Fused GCNPE_mean forward.

    Returns (outputs, finaloutput):
      outputs:     (3, N, nclass)  -- the three log-softmax outputs
      finaloutput: (1, N, nclass)  -- mean over the three (keepdim=True)

    use_bf16: bf16 matmul inputs (f32 accumulation in the MXU, f32 bias/relu/
    log-softmax). Only worthwhile once the adj contraction dim is large enough to
    be MXU-throughput bound (gated by bf16_min_n); keep f32 on v5e (no bf16 VPU).
    """
    n, nfeat = x.shape
    nhid = w1.shape[1]
    nclass = w2.shape[1]

    do_bf16 = bool(use_bf16) and n >= bf16_min_n
    cdt = jnp.bfloat16 if do_bf16 else jnp.float32

    # ---- wrapper-side operand packing (runs once under jit; not on the kernel's
    # serial chain) ---------------------------------------------------------------
    xs_cat = jnp.concatenate([x, datareal1, datareal2], axis=1).astype(cdt)  # (N, 3F)
    adj_m = adj.astype(cdt)                                                   # (N, N)
    w1_bd = jax.scipy.linalg.block_diag(w1, w1, w1).astype(cdt)               # (3F, 3H)
    w2_bd = jax.scipy.linalg.block_diag(w2, w2, w2).astype(cdt)               # (3H, 3C)
    b1_t = jnp.tile(b1.reshape(1, nhid), (1, 3)).astype(jnp.float32)          # (1, 3H)
    b2_t = jnp.tile(b2.reshape(1, nclass), (1, 3)).astype(jnp.float32)        # (1, 3C)

    vmem_spec = pl.BlockSpec(memory_space=pltpu.MemorySpace.VMEM)
    out = pl.pallas_call(
        _gcn_pe_mean_kernel,
        out_shape=jax.ShapeDtypeStruct((4, n, nclass), jnp.float32),
        in_specs=[vmem_spec] * 6,
        out_specs=vmem_spec,
        compiler_params=_compiler_params(),
    )(xs_cat, adj_m, w1_bd, b1_t, w2_bd, b2_t)

    outputs = out[0:3]          # (3, N, nclass)
    finaloutput = out[3:4]      # (1, N, nclass)
    return outputs, finaloutput


def _reference(x, d1, d2, adj, w1, b1, w2, b2):
    """Pure-JAX reference of the PyTorch forward (inference mode)."""
    def one(xi):
        h = jnp.maximum(adj @ (xi @ w1) + b1, 0.0)
        logits = adj @ (h @ w2) + b2
        return jax.nn.log_softmax(logits, axis=1)
    outs = jnp.stack([one(x), one(d1), one(d2)])
    return outs, jnp.mean(outs, axis=0, keepdims=True)


if __name__ == "__main__":
    # Small, forward-consistent shapes.
    N = 16        # number of graph nodes
    NFEAT = 32
    NHID = 32
    NCLASS = 16
    # dropout = 0.5 (identity at inference), tau = 0.9 (unused in forward)

    key = jax.random.PRNGKey(0)
    kx, k1, k2, ka, kw1, kb1, kw2, kb2 = jax.random.split(key, 8)

    x = jax.random.normal(kx, (N, NFEAT), jnp.float32)
    datareal1 = jax.random.normal(k1, (N, NFEAT), jnp.float32)
    datareal2 = jax.random.normal(k2, (N, NFEAT), jnp.float32)

    # Deterministic dense "normalized adjacency": random non-negative + self-loops,
    # row-normalized.
    a = jax.random.uniform(ka, (N, N), jnp.float32)
    a = (a > 0.7).astype(jnp.float32) + jnp.eye(N, dtype=jnp.float32)
    adj = a / jnp.sum(a, axis=1, keepdims=True)

    # GraphConvolution parameters (deterministic synthetic init).
    w1 = jax.random.normal(kw1, (NFEAT, NHID), jnp.float32) * (1.0 / jnp.sqrt(NFEAT))
    b1 = jax.random.normal(kb1, (NHID,), jnp.float32) * 0.01
    w2 = jax.random.normal(kw2, (NHID, NCLASS), jnp.float32) * (1.0 / jnp.sqrt(NHID))
    b2 = jax.random.normal(kb2, (NCLASS,), jnp.float32) * 0.01
    # Note: fc11 / fc22 (projection_node head) are not used in forward(); omitted.

    ref_outs, ref_final = _reference(x, datareal1, datareal2, adj, w1, b1, w2, b2)

    # ---- exact (f32) path -----------------------------------------------------
    outputs, finaloutput = gcn_pe_mean_forward(x, datareal1, datareal2, adj,
                                               w1, b1, w2, b2)
    jax.block_until_ready((outputs, finaloutput))
    assert outputs.shape == (3, N, NCLASS)
    assert finaloutput.shape == (1, N, NCLASS)
    assert jnp.allclose(outputs, ref_outs, atol=1e-5, rtol=1e-5)
    assert jnp.allclose(finaloutput, ref_final, atol=1e-5, rtol=1e-5)

    # ---- bf16 fast path (forced here despite tiny N, to exercise the code path;
    # f32 accumulation, loose tolerance) ------------------------------------------
    outputs_bf, final_bf = gcn_pe_mean_forward(x, datareal1, datareal2, adj,
                                               w1, b1, w2, b2,
                                               use_bf16=True, bf16_min_n=0)
    jax.block_until_ready((outputs_bf, final_bf))
    assert jnp.allclose(outputs_bf, ref_outs, atol=1e-1, rtol=1e-1)
    assert jnp.allclose(final_bf, ref_final, atol=1e-1, rtol=1e-1)

    print("KERNEL_OK")
</pallas_src>

<mosaic_0001>
module attributes {stable_mosaic.version = 11 : i64} {
  func.func @_gcn_pe_mean_kernel(%arg0: memref<16x96xf32, #tpu.memory_space<vmem>>, %arg1: memref<16x16xf32, #tpu.memory_space<vmem>>, %arg2: memref<96x96xf32, #tpu.memory_space<vmem>>, %arg3: memref<1x96xf32, #tpu.memory_space<vmem>>, %arg4: memref<96x48xf32, #tpu.memory_space<vmem>>, %arg5: memref<1x48xf32, #tpu.memory_space<vmem>>, %arg6: memref<4x16x16xf32, #tpu.memory_space<vmem>>) attributes {dimension_semantics = [], scalar_prefetch = 0 : i64, scratch_operands = 0 : i64, tpu.core_type = #tpu.core_type<tc>} {
    %c0 = arith.constant 0 : index
    %c0_0 = arith.constant 0 : index
    %0 = vector.load %arg1[%c0, %c0_0] : memref<16x16xf32, #tpu.memory_space<vmem>>, vector<16x16xf32>
    %c0_1 = arith.constant 0 : index
    %c0_2 = arith.constant 0 : index
    %1 = vector.load %arg0[%c0_1, %c0_2] : memref<16x96xf32, #tpu.memory_space<vmem>>, vector<16x96xf32>
    %c0_3 = arith.constant 0 : index
    %c0_4 = arith.constant 0 : index
    %2 = vector.load %arg2[%c0_3, %c0_4] : memref<96x96xf32, #tpu.memory_space<vmem>>, vector<96x96xf32>
    %cst = arith.constant dense<0.000000e+00> : vector<16x96xf32>
    %3 = tpu.matmul %1, %2, %cst {dimension_numbers = #tpu.dot_dimension_numbers<[1], [0], [0], [1], [0, 0, 1, 1], [], []>} : vector<16x96xf32>, vector<96x96xf32>, vector<16x96xf32> -> vector<16x96xf32>
    %cst_5 = arith.constant dense<0.000000e+00> : vector<16x96xf32>
    %4 = tpu.matmul %0, %3, %cst_5 {dimension_numbers = #tpu.dot_dimension_numbers<[1], [0], [0], [1], [0, 0, 1, 1], [], []>} : vector<16x16xf32>, vector<16x96xf32>, vector<16x96xf32> -> vector<16x96xf32>
    %c0_6 = arith.constant 0 : index
    %c0_7 = arith.constant 0 : index
    %5 = vector.load %arg3[%c0_6, %c0_7] : memref<1x96xf32, #tpu.memory_space<vmem>>, vector<1x96xf32>
    %6 = vector.broadcast %5 : vector<1x96xf32> to vector<16x96xf32>
    %7 = arith.addf %4, %6 : vector<16x96xf32>
    %cst_8 = arith.constant 0.000000e+00 : f32
    %8 = vector.broadcast %cst_8 : f32 to vector<16x96xf32>
    %9 = arith.maximumf %7, %8 : vector<16x96xf32>
    %c0_9 = arith.constant 0 : index
    %c0_10 = arith.constant 0 : index
    %10 = vector.load %arg4[%c0_9, %c0_10] : memref<96x48xf32, #tpu.memory_space<vmem>>, vector<96x48xf32>
    %cst_11 = arith.constant dense<0.000000e+00> : vector<16x48xf32>
    %11 = tpu.matmul %9, %10, %cst_11 {dimension_numbers = #tpu.dot_dimension_numbers<[1], [0], [0], [1], [0, 0, 1, 1], [], []>} : vector<16x96xf32>, vector<96x48xf32>, vector<16x48xf32> -> vector<16x48xf32>
    %cst_12 = arith.constant dense<0.000000e+00> : vector<16x48xf32>
    %12 = tpu.matmul %0, %11, %cst_12 {dimension_numbers = #tpu.dot_dimension_numbers<[1], [0], [0], [1], [0, 0, 1, 1], [], []>} : vector<16x16xf32>, vector<16x48xf32>, vector<16x48xf32> -> vector<16x48xf32>
    %c0_13 = arith.constant 0 : index
    %c0_14 = arith.constant 0 : index
    %13 = vector.load %arg5[%c0_13, %c0_14] : memref<1x48xf32, #tpu.memory_space<vmem>>, vector<1x48xf32>
    %14 = vector.broadcast %13 : vector<1x48xf32> to vector<16x48xf32>
    %15 = arith.addf %12, %14 : vector<16x48xf32>
    %16 = vector.extract_strided_slice %15 {offsets = [0, 0], sizes = [16, 16], strides = [1, 1]} : vector<16x48xf32> to vector<16x16xf32>
    %cst_15 = arith.constant dense<0xFF800000> : vector<16xf32>
    %17 = vector.multi_reduction <maximumf>, %16, %cst_15 [1] : vector<16x16xf32> to vector<16xf32>
    %18 = vector.shape_cast %17 : vector<16xf32> to vector<16x1xf32>
    %19 = vector.broadcast %18 : vector<16x1xf32> to vector<16x16xf32>
    %20 = arith.subf %16, %19 : vector<16x16xf32>
    %21 = math.exp %20 : vector<16x16xf32>
    %cst_16 = arith.constant dense<0.000000e+00> : vector<16xf32>
    %22 = vector.multi_reduction <add>, %21, %cst_16 [1] : vector<16x16xf32> to vector<16xf32>
    %23 = vector.shape_cast %22 : vector<16xf32> to vector<16x1xf32>
    %24 = math.log %23 : vector<16x1xf32>
    %25 = vector.broadcast %24 : vector<16x1xf32> to vector<16x16xf32>
    %26 = arith.subf %20, %25 : vector<16x16xf32>
    %c0_17 = arith.constant 0 : index
    %c0_18 = arith.constant 0 : index
    %c0_19 = arith.constant 0 : index
    %27 = vector.load %arg6[%c0_17, %c0_18, %c0_19] : memref<4x16x16xf32, #tpu.memory_space<vmem>>, vector<1x16x16xf32>
    %28 = vector.shape_cast %27 : vector<1x16x16xf32> to vector<16x16xf32>
    %29 = vector.shape_cast %26 : vector<16x16xf32> to vector<1x16x16xf32>
    tpu.vector_store %arg6[%c0_17, %c0_18, %c0_19], %29 {strides = array<i32>} : memref<4x16x16xf32, #tpu.memory_space<vmem>>, vector<1x16x16xf32>,
    %30 = vector.extract_strided_slice %15 {offsets = [0, 16], sizes = [16, 16], strides = [1, 1]} : vector<16x48xf32> to vector<16x16xf32>
    %cst_20 = arith.constant dense<0xFF800000> : vector<16xf32>
    %31 = vector.multi_reduction <maximumf>, %30, %cst_20 [1] : vector<16x16xf32> to vector<16xf32>
    %32 = vector.shape_cast %31 : vector<16xf32> to vector<16x1xf32>
    %33 = vector.broadcast %32 : vector<16x1xf32> to vector<16x16xf32>
    %34 = arith.subf %30, %33 : vector<16x16xf32>
    %35 = math.exp %34 : vector<16x16xf32>
    %cst_21 = arith.constant dense<0.000000e+00> : vector<16xf32>
    %36 = vector.multi_reduction <add>, %35, %cst_21 [1] : vector<16x16xf32> to vector<16xf32>
    %37 = vector.shape_cast %36 : vector<16xf32> to vector<16x1xf32>
    %38 = math.log %37 : vector<16x1xf32>
    %39 = vector.broadcast %38 : vector<16x1xf32> to vector<16x16xf32>
    %40 = arith.subf %34, %39 : vector<16x16xf32>
    %c1 = arith.constant 1 : index
    %c0_22 = arith.constant 0 : index
    %c0_23 = arith.constant 0 : index
    %41 = vector.load %arg6[%c1, %c0_22, %c0_23] : memref<4x16x16xf32, #tpu.memory_space<vmem>>, vector<1x16x16xf32>
    %42 = vector.shape_cast %41 : vector<1x16x16xf32> to vector<16x16xf32>
    %43 = vector.shape_cast %40 : vector<16x16xf32> to vector<1x16x16xf32>
    tpu.vector_store %arg6[%c1, %c0_22, %c0_23], %43 {strides = array<i32>} : memref<4x16x16xf32, #tpu.memory_space<vmem>>, vector<1x16x16xf32>,
    %44 = arith.addf %26, %40 : vector<16x16xf32>
    %45 = vector.extract_strided_slice %15 {offsets = [0, 32], sizes = [16, 16], strides = [1, 1]} : vector<16x48xf32> to vector<16x16xf32>
    %cst_24 = arith.constant dense<0xFF800000> : vector<16xf32>
    %46 = vector.multi_reduction <maximumf>, %45, %cst_24 [1] : vector<16x16xf32> to vector<16xf32>
    %47 = vector.shape_cast %46 : vector<16xf32> to vector<16x1xf32>
    %48 = vector.broadcast %47 : vector<16x1xf32> to vector<16x16xf32>
    %49 = arith.subf %45, %48 : vector<16x16xf32>
    %50 = math.exp %49 : vector<16x16xf32>
    %cst_25 = arith.constant dense<0.000000e+00> : vector<16xf32>
    %51 = vector.multi_reduction <add>, %50, %cst_25 [1] : vector<16x16xf32> to vector<16xf32>
    %52 = vector.shape_cast %51 : vector<16xf32> to vector<16x1xf32>
    %53 = math.log %52 : vector<16x1xf32>
    %54 = vector.broadcast %53 : vector<16x1xf32> to vector<16x16xf32>
    %55 = arith.subf %49, %54 : vector<16x16xf32>
    %c2 = arith.constant 2 : index
    %c0_26 = arith.constant 0 : index
    %c0_27 = arith.constant 0 : index
    %56 = vector.load %arg6[%c2, %c0_26, %c0_27] : memref<4x16x16xf32, #tpu.memory_space<vmem>>, vector<1x16x16xf32>
    %57 = vector.shape_cast %56 : vector<1x16x16xf32> to vector<16x16xf32>
    %58 = vector.shape_cast %55 : vector<16x16xf32> to vector<1x16x16xf32>
    tpu.vector_store %arg6[%c2, %c0_26, %c0_27], %58 {strides = array<i32>} : memref<4x16x16xf32, #tpu.memory_space<vmem>>, vector<1x16x16xf32>,
    %59 = arith.addf %44, %55 : vector<16x16xf32>
    %cst_28 = arith.constant 0.333333343 : f32
    %60 = vector.broadcast %cst_28 : f32 to vector<16x16xf32>
    %61 = arith.mulf %59, %60 : vector<16x16xf32>
    %c3 = arith.constant 3 : index
    %c0_29 = arith.constant 0 : index
    %c0_30 = arith.constant 0 : index
    %62 = vector.load %arg6[%c3, %c0_29, %c0_30] : memref<4x16x16xf32, #tpu.memory_space<vmem>>, vector<1x16x16xf32>
    %63 = vector.shape_cast %62 : vector<1x16x16xf32> to vector<16x16xf32>
    %64 = vector.shape_cast %61 : vector<16x16xf32> to vector<1x16x16xf32>
    tpu.vector_store %arg6[%c3, %c0_29, %c0_30], %64 {strides = array<i32>} : memref<4x16x16xf32, #tpu.memory_space<vmem>>, vector<1x16x16xf32>,
    return
  }
}

</mosaic_0001>

<bundles_post_ra>
// kernel: tpu_custom_call.1
= control target key start
LH: loop header
LB: loop body
LE: loop exit
PB: predicated region body
PF: predicated region fallthrough
CT: control target
= control target key end

     0   :  { %vm40_vm0 = vcmask 785408   ;;  %s940_s0 = inlined_call_operand.vmem [shape: f32[16,96], index: 0, kind: input, shape index: {}]   ;;  %s941_s1 = inlined_call_operand.vmem [shape: f32[16,16], index: 1, kind: input, shape index: {}]   ;;  %s942_s2 = inlined_call_operand.vmem [shape: f32[96,96], index: 2, kind: input, shape index: {}]   ;;  %s943_s3 = inlined_call_operand.vmem [shape: f32[1,96], index: 3, kind: input, shape index: {}]   ;;  %s944_s4 = inlined_call_operand.vmem [shape: f32[96,48], index: 4, kind: input, shape index: {}]   ;;  %s945_s5 = inlined_call_operand.vmem [shape: f32[1,48], index: 5, kind: input, shape index: {}]   ;;  %s946_s6 = inlined_call_operand.hbm [shape: f32[4,16,16], index: 6, kind: output, shape index: {}]  }
   0x1   :  { %v28_v0 = vld [vmem:[%s942_s2] sm:$0xff]  ;;  %v29_v1 = vld [vmem:[%s942_s2 + $0x8] sm:$0xff]  ;;  %v30_v2 = vld [vmem:[%s942_s2 + $0x10] sm:$0xff] }
   0x2   :  { %v641_v3 = vpack.c.bf16 %v29_v1, %v28_v0  ;;  %v31_v4 = vld [vmem:[%s942_s2 + $0x18] sm:$0xff]  ;;  %v32_v6 = vld [vmem:[%s942_s2 + $0x20] sm:$0xff]  ;;  %v33_v7 = vld [vmem:[%s942_s2 + $0x28] sm:$0xff] }
   0x3   :  { %v645_v5 = vpack.c.bf16 %v31_v4, %v30_v2  ;;  %v26_v8 = vld [vmem:[%s940_s0] sm:$0xff] }
   0x4   :  { %642 = vmatprep.subr.bf16.mxu0 %v641_v3 }
   0x5   :  { %644 = vmatpush3.bf16.msra.mxu0 %v641_v3 }
   0x6   :  { %11 = vsyncpa [#allocation3], 0  ;;  %646 = vmatprep.subr.bf16.mxu0 %v645_v5  ;;  %v649_v9 = vpack.c.bf16 %v33_v7, %v32_v6  ;;  %597 = vmatprep.mubr.msk.f32.mxu0 %vm40_vm0, %v26_v8  ;;  %v34_v10 = vld [vmem:[%s942_s2 + $0x30] sm:$0xff]  ;;  %v35_v11 = vld [vmem:[%s942_s2 + $0x38] sm:$0xff]  ;;  %vm129_vm1 = vcmask 130048   ;;  %vm460_vm2 = vcmask 392448  }
   0x7   :  { %v653_v12 = vpack.c.bf16 %v35_v11, %v34_v10  ;;  %v36_v13 = vld [vmem:[%s942_s2 + $0x40] sm:$0xff]  ;;  %v37_v14 = vld [vmem:[%s942_s2 + $0x48] sm:$0xff]  ;;  %v38_v16 = vld [vmem:[%s942_s2 + $0x50] sm:$0xff]  ;;  %vm414_vm3 = vcmask 261248   ;;  %s752_s28 = smov [#allocation2]  }
   0x8   :  { %v657_v15 = vpack.c.bf16 %v37_v14, %v36_v13  ;;  %v39_v17 = vld [vmem:[%s942_s2 + $0x58] sm:$0xff]  ;;  %v27_v19 = vld [vmem:[%s940_s0 + $0x8] sm:$0xff]  ;;  %v24_v20 = vld [vmem:[%s941_s1] sm:$0xff]  ;;  %s516_s29 = sshll.u32 %s752_s28, 4  ;;  %s517_s29 = int_to_ptr.vmem [resolvable:$true] %s516_s29 }
   0x9   :  { %648 = vmatpush3.bf16.msra.mxu0 %v645_v5  ;;  %v661_v18 = vpack.c.bf16 %v39_v17, %v38_v16  ;;  %604 = vmatprep.mubr.msk.f32.mxu1 %vm129_vm1, %v24_v20  ;;  %v213_v21 = vld [vmem:[%s944_s4] sm:$0xff]  ;;  %v214_v22 = vld [vmem:[%s944_s4 + $0x8] sm:$0xff]  ;;  %v215_v27 = vld [vmem:[%s944_s4 + $0x10] sm:$0xff]  ;;  %s726_s0 = scalar_lea.vmem %s517_s29, 1024  ;;  %p731_p1 = scmp.lt.s32.totalorder %s517_s29, %s517_s29 }
   0xa   :  { %650 = vmatprep.subr.bf16.mxu0 %v649_v9  ;;  %v669_v26 = vpack.c.bf16 %v214_v22, %v213_v21  ;;  %v216_v28 = vld [vmem:[%s944_s4 + $0x18] sm:$0xff]  ;;  %v25_v29 = vld [vmem:[%s941_s1 + $0x8] sm:$0xff]  ;;  %v217_v31 = vld [vmem:[%s944_s4 + $0x20] sm:$0xff]  ;;  %p727_p0 = scmp.ne.s32.totalorder %s517_s29, %s726_s0  ;;  %p732_p2 = scmp.lt.s32.totalorder %s726_s0, %s726_s0 }
   0xb   :  { %v673_v30 = vpack.c.bf16 %v216_v28, %v215_v27  ;;  %v218_v32 = vld [vmem:[%s944_s4 + $0x28] sm:$0xff]  ;;  %v219_v34 = vld [vmem:[%s944_s4 + $0x30] sm:$0xff]  ;;  %v220_v35 = vld [vmem:[%s944_s4 + $0x38] sm:$0xff] }
   0xc   :  { %v677_v33 = vpack.c.bf16 %v218_v32, %v217_v31  ;;  %v681_v36 = vpack.c.bf16 %v220_v35, %v219_v34  ;;  %v221_v37 = vld [vmem:[%s944_s4 + $0x40] sm:$0xff]  ;;  %v222_v38 = vld [vmem:[%s944_s4 + $0x48] sm:$0xff]  ;;  %v223_v40 = vld [vmem:[%s944_s4 + $0x50] sm:$0xff]  ;;  %p733_p3 = por %p732_p2, %p731_p1 }
   0xd   :  { %652 = vmatpush3.bf16.msra.mxu0 %v649_v9  ;;  %v685_v39 = vpack.c.bf16 %v222_v38, %v221_v37  ;;  %v224_v41 = vld [vmem:[%s944_s4 + $0x58] sm:$0xff]  ;;  %v529_v43 = vld [vmem:[%s943_s3] ss:$0 sm:$0xff]  ;;  %s750_s3 = smov 112  }
   0xe   :  { %654 = vmatprep.subr.bf16.mxu0 %v653_v12  ;;  %v689_v42 = vpack.c.bf16 %v224_v41, %v223_v40  ;;  %v534_v53 = vld [vmem:[%s945_s5] ss:$0 sm:$0xff]  ;;  %s751_s5 = smov 96   ;;  %p734_p4 = pnand %p733_p3, %p727_p0 }
  0x11   :  { %656 = vmatpush3.bf16.msra.mxu0 %v653_v12 }
  0x12   :  { %658 = vmatprep.subr.bf16.mxu0 %v657_v15 }
  0x15   :  { %660 = vmatpush3.bf16.msra.mxu0 %v657_v15 }
  0x16   :  { %662 = vmatprep.subr.bf16.mxu0 %v661_v18 }
  0x19   :  { %664 = vmatpush3.bf16.msra.mxu0 %v661_v18 }
  0x1c   :  { %598 = vmatmul.mubr.msk.f32.vlgmr.msra.gmra.mrb[0].mxu0 %vm40_vm0, %v27_v19 }
  0x1d   :  { %638 = vmatprep.mubr.msk.f32.mxu0 %vm129_vm1, %v24_v20 }
  0xef   :  { %v599_v23 = vpop.f32.mrb[0].mxu0 }
  0xf0   :  { %v113_v24 = vpop.f32.mrb[1].mxu0 }
  0xf1   :  { %v665_v25 = vpack.c.bf16 %v599_v23, %v113_v24 }
  0xf3   :  { %666 = vmatprep.subr.bf16.mxu1 %v665_v25 }
  0xf4   :  { %668 = vmatpush3.bf16.msra.mxu1 %v665_v25 }
  0xf5   :  { %670 = vmatprep.subr.bf16.mxu1 %v669_v26 }
  0xf7   :  { %605 = vmatmul.mubr.msk.f32.vlgmr.msra.gmra.mrb[0].mxu1 %vm129_vm1, %v25_v29 }
  0xf8   :  { %672 = vmatpush3.bf16.msra.mxu1 %v669_v26 }
  0xf9   :  { %674 = vmatprep.subr.bf16.mxu1 %v673_v30 }
  0xfc   :  { %676 = vmatpush3.bf16.msra.mxu1 %v673_v30 }
  0xfd   :  { %678 = vmatprep.subr.bf16.mxu1 %v677_v33 }
 0x100   :  { %680 = vmatpush3.bf16.msra.mxu1 %v677_v33 }
 0x101   :  { %682 = vmatprep.subr.bf16.mxu1 %v681_v36 }
 0x104   :  { %684 = vmatpush3.bf16.msra.mxu1 %v681_v36 }
 0x105   :  { %686 = vmatprep.subr.bf16.mxu1 %v685_v39 }
 0x108   :  { %688 = vmatpush3.bf16.msra.mxu1 %v685_v39 }
 0x109   :  { %690 = vmatprep.subr.bf16.mxu1 %v689_v42 }
 0x10c   :  { %692 = vmatpush3.bf16.msra.mxu1 %v689_v42 }
 0x1ca   :  { %v606_v44 = vpop.f32.mrb[0].mxu1 }
 0x1cb   :  { %v208_v45 = vadd.f32 %v606_v44, %v529_v43  ;;  %v202_v46 = vpop.f32.mrb[1].mxu1 }
 0x1cc   :  { %v203_v47 = vadd.f32 %v529_v43, %v202_v46 }
 0x1cd   :  { %v212_v49 = vmax.f32 %v208_v45, 0.0 }
 0x1ce   :  { %v211_v48 = vmax.f32 %v203_v47, 0.0 }
 0x1d0   :  { %631 = vmatprep.mubr.msk.f32.mxu1 %vm40_vm0, %v211_v48 }
 0x1d1   :  { %632 = vmatmul.mubr.msk.f32.vlgmr.msra.gmra.mrb[2].mxu1 %vm40_vm0, %v212_v49 }
 0x2a4   :  { %v633_v50 = vpop.f32.mrb[2].mxu1 }
 0x2a5   :  { %v297_v51 = vpop.f32.mrb[3].mxu1 }
 0x2a6   :  { %v693_v52 = vpack.c.bf16 %v633_v50, %v297_v51 }
 0x2a8   :  { %694 = vmatprep.subr.bf16.mxu0 %v693_v52 }
 0x2a9   :  { %696 = vmatpush3.bf16.msra.mxu0 %v693_v52 }
 0x2ac   :  { %639 = vmatmul.mubr.msk.f32.vlgmr.msra.gmra.mrb[2].mxu0 %vm129_vm1, %v25_v29 }
 0x37f   :  { %v640_v54 = vpop.f32.mrb[2].mxu0 }
 0x380   :  { %v379_v55 = vpop.f32.mrb[3].mxu0  ;;  %v385_v57 = vadd.f32 %v640_v54, %v534_v53 }
 0x381   :  { %v380_v56 = vadd.f32 %v534_v53, %v379_v55 }
 0x382   :  { %v464_v60 = vsel %vm460_vm2, %v385_v57, -inf  ;;  %v418_v61 = vsel %vm414_vm3, %v385_v57, -inf  ;;  %v391_v15 = vsel %vm129_vm1, %v385_v57, -inf }
 0x383   :  { %v461_v58 = vsel %vm460_vm2, %v380_v56, -inf  ;;  %v415_v59 = vsel %vm414_vm3, %v380_v56, -inf  ;;  %v388_v14 = vsel %vm129_vm1, %v380_v56, -inf }
 0x384   :  { %462 = vmax.xlane.f32.xlu1 %v461_v58  ;;  %416 = vmax.xlane.f32.xlu0 %v415_v59 }
 0x388   :  { %465 = vmax.xlane.f32.xlu1 %v464_v60  ;;  %419 = vmax.xlane.f32.xlu0 %v418_v61 }
 0x411   :  { %v417_v62 = vpop.xlane.xlu0 %416  ;;  %v463_v63 = vpop.xlane.xlu1 %462 }
 0x412   :  { %v888_v0 = vsub.f32 %v380_v56, %v417_v62  ;;  %v893_v4 = vsub.f32 %v380_v56, %v463_v63 }
 0x414   :  { %v423_v1 = vmul.f32 1.442695, %v888_v0  ;;  %v469_v7 = vmul.f32 1.442695, %v893_v4 }
 0x415   :  { %v420_v2 = vpop.xlane.xlu0 %419  ;;  %v466_v5 = vpop.xlane.xlu1 %465 }
 0x416   :  { %v891_v3 = vsub.f32 %v385_v57, %v420_v2  ;;  %702 = vpow2.f32 %v423_v1  ;;  %v897_v8 = vsub.f32 %v385_v57, %v466_v5 }
 0x418   :  { %v425_v6 = vmul.f32 1.442695, %v891_v3  ;;  %v471_v9 = vmul.f32 1.442695, %v897_v8 }
 0x41a   :  { %704 = vpow2.f32 %v425_v6 }
 0x41b   :  { %706 = vpow2.f32 %v469_v7 }
 0x41c   :  { %708 = vpow2.f32 %v471_v9 }
 0x420   :  { %v703_v10 = vpop.eup %702 }
 0x421   :  { %429 = vrot.lane.b32.xlu0 %v703_v10, %s750_s3 }
 0x424   :  { %v705_v11 = vpop.eup %704 }
 0x425   :  { %431 = vrot.lane.b32.xlu1 %v705_v11, %s750_s3  ;;  %v707_v12 = vpop.eup %706 }
 0x426   :  { %v709_v13 = vpop.eup %708 }
 0x429   :  { %475 = vrot.lane.b32.xlu1 %v707_v12, %s751_s5 }
 0x42d   :  { %477 = vrot.lane.b32.xlu1 %v709_v13, %s751_s5 }
 0x440   :  { %389 = vmax.xlane.f32.xlu0 %v388_v14 }
 0x451   :  { %392 = vmax.xlane.f32.xlu1 %v391_v15 }
 0x493   :  { %v430_v18 = vpop.permute.xlu0 %429 }
 0x494   :  { %v435_v20 = vsel %vm129_vm1, %v430_v18, 0.0 }
 0x497   :  { %v432_v16 = vpop.permute.xlu1 %431 }
 0x498   :  { %v438_v17 = vsel %vm129_vm1, %v432_v16, 0.0 }
 0x499   :  { %439 = vadd.xlane.f32.xlu0 %v438_v17 }
 0x49b   :  { %v476_v19 = vpop.permute.xlu1 %475 }
 0x49c   :  { %v481_v23 = vsel %vm129_vm1, %v476_v19, 0.0 }
 0x49d   :  { %436 = vadd.xlane.f32.xlu0 %v435_v20 }
 0x49f   :  { %v478_v21 = vpop.permute.xlu1 %477 }
 0x4a0   :  { %v484_v22 = vsel %vm129_vm1, %v478_v21, 0.0 }
 0x4a1   :  { %485 = vadd.xlane.f32.xlu1 %v484_v22  ;;  %482 = vadd.xlane.f32.xlu0 %v481_v23 }
 0x4cd   :  { %v390_v24 = vpop.xlane.xlu0 %389 }
 0x4ce   :  { %v394_v25 = vsub.f32 %v380_v56, %v390_v24 }
 0x4d0   :  { %v396_v26 = vmul.f32 1.442695, %v394_v25 }
 0x4d2   :  { %710 = vpow2.f32 %v396_v26 }
 0x4dc   :  { %v711_v27 = vpop.eup %710 }
 0x4dd   :  { %v400_v28 = vsel %vm129_vm1, %v711_v27, 0.0 }
 0x4de   :  { %v393_v29 = vpop.xlane.xlu1 %392  ;;  %401 = vadd.xlane.f32.xlu0 %v400_v28 }
 0x4df   :  { %v395_v30 = vsub.f32 %v385_v57, %v393_v29 }
 0x4e1   :  { %v398_v31 = vmul.f32 1.442695, %v395_v30 }
 0x4e3   :  { %712 = vpow2.f32 %v398_v31 }
 0x4ed   :  { %v713_v32 = vpop.eup %712 }
 0x4ee   :  { %v403_v33 = vsel %vm129_vm1, %v713_v32, 0.0 }
 0x4ef   :  { %404 = vadd.xlane.f32.xlu1 %v403_v33 }
 0x526   :  { %v440_v34 = vpop.xlane.xlu0 %439 }
 0x527   :  { %714 = vlog2.f32 %v440_v34 }
 0x52a   :  { %v437_v35 = vpop.xlane.xlu0 %436 }
 0x52b   :  { %716 = vlog2.f32 %v437_v35 }
 0x52e   :  { %v486_v36 = vpop.xlane.xlu1 %485  ;;  %v483_v37 = vpop.xlane.xlu0 %482 }
 0x52f   :  { %718 = vlog2.f32 %v486_v36 }
 0x530   :  { %720 = vlog2.f32 %v483_v37 }
 0x531   :  { %v715_v38 = vpop.eup %714 }
 0x532   :  { %v444_v39 = vmul.f32 0.6931472, %v715_v38 }
 0x534   :  { %v446_v40 = vsub.f32 %v891_v3, %v444_v39 }
 0x535   :  { %v717_v41 = vpop.eup %716 }
 0x536   :  { %v442_v42 = vmul.f32 0.6931472, %v717_v41  ;;  %451 = vrot.lane.b32.xlu1 %v446_v40, %s750_s3 }
 0x538   :  { %v445_v43 = vsub.f32 %v888_v0, %v442_v42 }
 0x539   :  { %v719_v44 = vpop.eup %718 }
 0x53a   :  { %v721_v45 = vpop.eup %720  ;;  %449 = vrot.lane.b32.xlu0 %v445_v43, %s750_s3  ;;  %v490_v47 = vmul.f32 0.6931472, %v719_v44 }
 0x53b   :  { %v488_v46 = vmul.f32 0.6931472, %v721_v45 }
 0x53c   :  { %v492_v49 = vsub.f32 %v897_v8, %v490_v47 }
 0x53d   :  { %v491_v48 = vsub.f32 %v893_v4, %v488_v46 }
 0x53f   :  { %495 = vrot.lane.b32.xlu1 %v491_v48, %s751_s5 }
 0x543   :  { %497 = vrot.lane.b32.xlu1 %v492_v49, %s751_s5 }
 0x56b   :  { %v402_v50 = vpop.xlane.xlu0 %401 }
 0x56c   :  { %722 = vlog2.f32 %v402_v50 }
 0x576   :  { %v723_v51 = vpop.eup %722 }
 0x577   :  { %v407_v52 = vmul.f32 0.6931472, %v723_v51 }
 0x579   :  { %v410_v53 = vsub.f32 %v394_v25, %v407_v52 }
 0x57b   :  { %412 = vst.msk [vmem:[#allocation2] sm:$0xff] %vm129_vm1, %v410_v53 }
 0x57c   :  { %v405_v54 = vpop.xlane.xlu1 %404 }
 0x57d   :  { %724 = vlog2.f32 %v405_v54 }
 0x587   :  { %v725_v55 = vpop.eup %724 }
 0x588   :  { %v409_v56 = vmul.f32 0.6931472, %v725_v55 }
 0x58a   :  { %v411_v57 = vsub.f32 %v395_v30, %v409_v56 }
 0x58c   :  { %413 = vst.msk [vmem:[#allocation2 + $0x8] sm:$0xff] %vm129_vm1, %v411_v57 }
 0x5a8   :  { %v452_v58 = vpop.permute.xlu1 %451 }
 0x5a9   :  { %457 = vst.msk [vmem:[#allocation2 + $0x18] sm:$0xff] %vm129_vm1, %v452_v58  ;;  %v459_v63 = vadd.f32 %v452_v58, %v411_v57 }
 0x5ac   :  { %v450_v59 = vpop.permute.xlu0 %449 }
 0x5ad   :  { %456 = vst.msk [vmem:[#allocation2 + $0x10] sm:$0xff] %vm129_vm1, %v450_v59  ;;  %v458_v60 = vadd.f32 %v450_v59, %v410_v53 }
 0x5b1   :  { %v496_v61 = vpop.permute.xlu1 %495 }
 0x5b2   :  { %502 = vst.msk [vmem:[#allocation2 + $0x20] sm:$0xff] %vm129_vm1, %v496_v61  ;;  %v504_v62 = vadd.f32 %v496_v61, %v458_v60 }
 0x5b4   :  { %v506_v0 = vmul.f32 0.33333334, %v504_v62 }
 0x5b5   :  { %v498_v1 = vpop.permute.xlu1 %497 }
 0x5b6   :  { %509 = vst.msk [vmem:[#allocation2 + $0x30] sm:$0xff] %vm129_vm1, %v506_v0  ;;  %503 = vst.msk [vmem:[#allocation2 + $0x28] sm:$0xff] %vm129_vm1, %v498_v1  ;;  %v505_v2 = vadd.f32 %v498_v1, %v459_v63 }
 0x5b8   :  { %v507_v3 = vmul.f32 0.33333334, %v505_v2 }
 0x5ba   :  { %510 = vst.msk [vmem:[#allocation2 + $0x38] sm:$0xff] %vm129_vm1, %v507_v3 }
 0x5bb   :  { %737 = shalt.err (!%p734_p4)
}
 0x5bc   :  { %s738_s8 = scalar_lea.hbm %s946_s6, 1024 }
 0x5bd   :  { %p739_p5 = scmp.ne.s32.totalorder %s946_s6, %s738_s8  ;;  %p742_p6 = scmp.lt.u32.totalorder %s738_s8, %s946_s6 }
 0x5bf   :  { %p744_p7 = pnand %p742_p6, %p739_p5 }
 0x5c1   :  { %747 = shalt.err (!%p744_p7)
}
 0x5c2   :  { %s753_s13 = smov 128   ;;  %s754_s14 = smov 8  }
 0x5c3   :  { %522 = dma.vmem_to_hbm [thread:$0]  %s517_s29, 1024, %s946_s6, [#allocation3], %s753_s13, %s753_s13, %s754_s14  }
 0x5c4   :  { %748 = dma.done.wait [#allocation3], 1024  }
 0x5c5   :  { %749 = vsyncadd [#allocation3], 4294966272 }
 0x5c6   :  { %526 = vsyncpa [#allocation3], 1 }

</bundles_post_ra>
